<compile_context>
chip_gen: v6e
topology: v6e:2x2x1
jax: 0.10.0
libtpu: 0.0.40
codegen_flags: <defaults>
</compile_context>

<pallas_src>
import jax
import jax.numpy as jnp
from jax.experimental import pallas as pl
from jax.experimental.pallas import tpu as pltpu


def _round_up(x: int, m: int) -> int:
    return ((x + m - 1) // m) * m


def _pick_tile_b(B: int, tile_b: int) -> int:
    """Batch tile: multiple of 8 (sublane), multiple of 128 for big batches,
    and split so a single-tile batch still yields >=2 grid steps (v7x 2 TCs)."""
    if B < 128:
        tb = _round_up(max(B, 8), 8)
    else:
        tb = _round_up(min(tile_b, _round_up(B, 128)), 128)
    if _round_up(B, tb) // tb == 1 and tb >= 256:
        tb //= 2                      # still a multiple of 128
    return tb


def highway_kernel(x_ref, w1_ref, b1_ref, w2_ref, b2_ref, o_ref):
    x = x_ref[...]                                   # (TILE_B, D_pad), input dtype
    xm = x.astype(w1_ref.dtype)                      # MXU operand (bf16 or f32)
    g = jnp.maximum(
        jnp.dot(xm, w1_ref[...], preferred_element_type=jnp.float32) + b1_ref[...],
        0.0)                                         # relu(fc1(x)), f32
    t = jax.nn.sigmoid(
        jnp.dot(xm, w2_ref[...], preferred_element_type=jnp.float32) + b2_ref[...])
    xf = x.astype(jnp.float32)
    # t*g + (1-t)*x  ==  x + t*(g - x)
    o_ref[...] = (xf + t * (g - xf)).astype(o_ref.dtype)


def prepare_highway_params(w1, b1, w2, b2, *, param_dtype=jnp.bfloat16):
    """Pad + cast the weights ONCE (hoisted out of the per-call hot path).

    w1/w2: (D, D) already transposed vs PyTorch's (out, in) storage.
    b1/b2: (D,) or (1, D). Biases stay f32 (added to the f32 accumulator).
    """
    D_in, D_out = w1.shape
    assert D_in == D_out, "Highway residual requires in_size == out_size"
    D = D_in
    b1 = jnp.asarray(b1).reshape(1, -1)
    b2 = jnp.asarray(b2).reshape(1, -1)
    assert b1.shape == (1, D) and b2.shape == (1, D), "bias shape mismatch"
    assert w2.shape == (D, D)

    D_pad = _round_up(max(D, 128), 128)
    pad = D_pad - D
    padw = (lambda w: jnp.pad(w, ((0, pad), (0, pad)))) if pad else (lambda w: w)
    padb = (lambda b: jnp.pad(b, ((0, 0), (0, pad)))) if pad else (lambda b: b)
    return dict(
        w1=padw(w1).astype(param_dtype),
        w2=padw(w2).astype(param_dtype),
        b1=padb(b1).astype(jnp.float32),
        b2=padb(b2).astype(jnp.float32),
        D=D,
        D_pad=D_pad,
    )


def _run_highway(x_p, w1_p, b1_p, w2_p, b2_p, *, tile_b, d_pad, single_buffer_params):
    B_pad = x_p.shape[0]
    grid = (B_pad // tile_b,)
    pmode = pl.Buffered(1) if single_buffer_params else None

    # --- VMEM footprint -> explicit scoped-VMEM limit --------------------
    x_it = x_p.dtype.itemsize
    w_it = w1_p.dtype.itemsize
    n_param_buf = 1 if single_buffer_params else 2
    vmem_need = (
        2 * tile_b * d_pad * x_it            # x tiles, double buffered
        + 2 * tile_b * d_pad * x_it          # out tiles, double buffered
        + n_param_buf * 2 * d_pad * d_pad * w_it   # resident w1 + w2
        + n_param_buf * 2 * 8 * d_pad * 4          # biases (sublane padded)
        + 4 * tile_b * d_pad * 4             # f32 intermediates (g, t, xf) + slack
    )
    vmem_limit = int(min(max(int(vmem_need * 1.25) + (2 << 20), 32 << 20), 100 << 20))

    cost = pl.CostEstimate(
        flops=2 * 2 * B_pad * d_pad * d_pad + 6 * B_pad * d_pad,
        transcendentals=B_pad * d_pad,                     # sigmoid
        bytes_accessed=(2 * B_pad * d_pad * x_it           # x in + out
                        + 2 * d_pad * d_pad * w_it         # weights
                        + 2 * d_pad * 4),                  # biases
    )

    return pl.pallas_call(
        highway_kernel,
        out_shape=jax.ShapeDtypeStruct((B_pad, d_pad), x_p.dtype),
        grid=grid,
        in_specs=[
            pl.BlockSpec((tile_b, d_pad), lambda i: (i, 0)),                   # x streams
            pl.BlockSpec((d_pad, d_pad), lambda i: (0, 0), pipeline_mode=pmode),  # w1 resident
            pl.BlockSpec((1, d_pad), lambda i: (0, 0), pipeline_mode=pmode),      # b1 resident
            pl.BlockSpec((d_pad, d_pad), lambda i: (0, 0), pipeline_mode=pmode),  # w2 resident
            pl.BlockSpec((1, d_pad), lambda i: (0, 0), pipeline_mode=pmode),      # b2 resident
        ],
        out_specs=pl.BlockSpec((tile_b, d_pad), lambda i: (i, 0)),
        compiler_params=pltpu.CompilerParams(
            dimension_semantics=("parallel",),
            vmem_limit_bytes=vmem_limit,
        ),
        cost_estimate=cost,
    )(x_p, w1_p, b1_p, w2_p, b2_p)


def highway_apply(params, x, *, tile_b=256):
    """x: (B, D) with D == params['D']. Returns (B, D)."""
    B, D = x.shape
    assert D == params["D"], "feature size mismatch with prepared params"
    D_pad = params["D_pad"]

    TILE_B = _pick_tile_b(B, tile_b)
    B_pad = _round_up(B, TILE_B)

    needs_pad = (B_pad != B) or (D_pad != D)
    x_p = jnp.pad(x, ((0, B_pad - B), (0, D_pad - D))) if needs_pad else x

    kwargs = dict(tile_b=TILE_B, d_pad=D_pad)
    try:
        out_p = _run_highway(x_p, params["w1"], params["b1"], params["w2"],
                             params["b2"], single_buffer_params=True, **kwargs)
    except Exception:
        # Fallback if this JAX build rejects pl.Buffered(1) on a pallas_call
        # BlockSpec: identical kernel, default (double) buffering.
        out_p = _run_highway(x_p, params["w1"], params["b1"], params["w2"],
                             params["b2"], single_buffer_params=False, **kwargs)

    return out_p[:B, :D] if needs_pad else out_p


def highway(x, w1, b1, w2, b2, *, param_dtype=jnp.bfloat16, tile_b=256):
    """Convenience one-shot wrapper (prepare + apply)."""
    return highway_apply(
        prepare_highway_params(w1, b1, w2, b2, param_dtype=param_dtype),
        x, tile_b=tile_b)


def highway_ref(x, w1, b1, w2, b2):
    """Pure-JAX reference matching the PyTorch forward."""
    g = jax.nn.relu(x @ w1 + b1)
    t = jax.nn.sigmoid(x @ w2 + b2)
    return t * g + (1.0 - t) * x


if __name__ == "__main__":
    batch = 8
    in_size = out_size = 32  # residual requires in_size == out_size

    key = jax.random.PRNGKey(0)
    kx, k1w, k1b, k2w, k2b = jax.random.split(key, 5)

    bound = 1.0 / jnp.sqrt(jnp.float32(in_size))
    x = jax.random.normal(kx, (batch, in_size), dtype=jnp.float32)
    # PyTorch stores weight as (out, in); we keep the transposed (in, out) form.
    w1 = jax.random.uniform(k1w, (in_size, out_size), jnp.float32, -bound, bound)
    b1 = jax.random.uniform(k1b, (1, out_size), jnp.float32, -bound, bound)
    w2 = jax.random.uniform(k2w, (in_size, out_size), jnp.float32, -bound, bound)
    b2 = jax.random.uniform(k2b, (1, out_size), jnp.float32, -bound, bound)

    ref = highway_ref(x, w1, b1, w2, b2)

    # Exact f32-MXU path (matches PyTorch numerics tightly).
    params_f32 = prepare_highway_params(w1, b1, w2, b2, param_dtype=jnp.float32)
    out_f32 = jax.block_until_ready(highway_apply(params_f32, x))
    assert out_f32.shape == (batch, out_size)
    assert jnp.allclose(out_f32, ref, atol=1e-5, rtol=1e-5), "f32 path mismatch"

    # Default bf16-MXU path (f32 accumulation + f32 epilogue/residual).
    params_bf16 = prepare_highway_params(w1, b1, w2, b2, param_dtype=jnp.bfloat16)
    out_bf16 = jax.block_until_ready(highway_apply(params_bf16, x))
    assert out_bf16.shape == (batch, out_size)
    assert jnp.allclose(out_bf16, ref, atol=5e-2, rtol=5e-2), "bf16 path mismatch"

    print("KERNEL_OK")
</pallas_src>

<mosaic_0001>
module attributes {stable_mosaic.version = 11 : i64} {
  func.func @highway_kernel(%arg0: i32, %arg1: memref<8x128xf32, #tpu.memory_space<vmem>>, %arg2: memref<128x128xf32, #tpu.memory_space<vmem>>, %arg3: memref<1x128xf32, #tpu.memory_space<vmem>>, %arg4: memref<128x128xf32, #tpu.memory_space<vmem>>, %arg5: memref<1x128xf32, #tpu.memory_space<vmem>>, %arg6: memref<8x128xf32, #tpu.memory_space<vmem>>) attributes {dimension_semantics = [#tpu.dimension_semantics<parallel>], iteration_bounds = array<i64: 1>, scalar_prefetch = 0 : i64, scratch_operands = 0 : i64, tpu.core_type = #tpu.core_type<tc>, window_params = [{transform_indices = @transform_0, window_bounds = array<i64: 8, 128>}, {pipeline_mode = #tpu.pipeline_mode<synchronous>, transform_indices = @transform_1, window_bounds = array<i64: 128, 128>}, {pipeline_mode = #tpu.pipeline_mode<synchronous>, transform_indices = @transform_2, window_bounds = array<i64: 1, 128>}, {pipeline_mode = #tpu.pipeline_mode<synchronous>, transform_indices = @transform_3, window_bounds = array<i64: 128, 128>}, {pipeline_mode = #tpu.pipeline_mode<synchronous>, transform_indices = @transform_4, window_bounds = array<i64: 1, 128>}, {transform_indices = @transform_5, window_bounds = array<i64: 8, 128>}]} {
    %c0 = arith.constant 0 : index
    %c0_0 = arith.constant 0 : index
    %0 = vector.load %arg1[%c0, %c0_0] : memref<8x128xf32, #tpu.memory_space<vmem>>, vector<8x128xf32>
    %c0_1 = arith.constant 0 : index
    %c0_2 = arith.constant 0 : index
    %1 = vector.load %arg2[%c0_1, %c0_2] : memref<128x128xf32, #tpu.memory_space<vmem>>, vector<128x128xf32>
    %cst = arith.constant dense<0.000000e+00> : vector<8x128xf32>
    %2 = tpu.matmul %0, %1, %cst {dimension_numbers = #tpu.dot_dimension_numbers<[1], [0], [0], [1], [0, 0, 1, 1], [], []>} : vector<8x128xf32>, vector<128x128xf32>, vector<8x128xf32> -> vector<8x128xf32>
    %c0_3 = arith.constant 0 : index
    %c0_4 = arith.constant 0 : index
    %3 = vector.load %arg3[%c0_3, %c0_4] : memref<1x128xf32, #tpu.memory_space<vmem>>, vector<1x128xf32>
    %4 = vector.broadcast %3 : vector<1x128xf32> to vector<8x128xf32>
    %5 = arith.addf %2, %4 : vector<8x128xf32>
    %cst_5 = arith.constant 0.000000e+00 : f32
    %6 = vector.broadcast %cst_5 : f32 to vector<8x128xf32>
    %7 = arith.maximumf %5, %6 : vector<8x128xf32>
    %c0_6 = arith.constant 0 : index
    %c0_7 = arith.constant 0 : index
    %8 = vector.load %arg4[%c0_6, %c0_7] : memref<128x128xf32, #tpu.memory_space<vmem>>, vector<128x128xf32>
    %cst_8 = arith.constant dense<0.000000e+00> : vector<8x128xf32>
    %9 = tpu.matmul %0, %8, %cst_8 {dimension_numbers = #tpu.dot_dimension_numbers<[1], [0], [0], [1], [0, 0, 1, 1], [], []>} : vector<8x128xf32>, vector<128x128xf32>, vector<8x128xf32> -> vector<8x128xf32>
    %c0_9 = arith.constant 0 : index
    %c0_10 = arith.constant 0 : index
    %10 = vector.load %arg5[%c0_9, %c0_10] : memref<1x128xf32, #tpu.memory_space<vmem>>, vector<1x128xf32>
    %11 = vector.broadcast %10 : vector<1x128xf32> to vector<8x128xf32>
    %12 = arith.addf %9, %11 : vector<8x128xf32>
    %13 = arith.negf %12 : vector<8x128xf32>
    %14 = math.exp %13 : vector<8x128xf32>
    %cst_11 = arith.constant 1.000000e+00 : f32
    %15 = vector.broadcast %cst_11 : f32 to vector<8x128xf32>
    %16 = arith.addf %15, %14 : vector<8x128xf32>
    %17 = arith.divf %15, %16 : vector<8x128xf32>
    %18 = arith.subf %7, %0 : vector<8x128xf32>
    %19 = arith.mulf %17, %18 : vector<8x128xf32>
    %20 = arith.addf %0, %19 : vector<8x128xf32>
    %c0_12 = arith.constant 0 : index
    %c0_13 = arith.constant 0 : index
    %21 = vector.load %arg6[%c0_12, %c0_13] : memref<8x128xf32, #tpu.memory_space<vmem>>, vector<8x128xf32>
    tpu.vector_store %arg6[%c0_12, %c0_13], %20 {strides = array<i32>} : memref<8x128xf32, #tpu.memory_space<vmem>>, vector<8x128xf32>,
    return
  }
  func.func @transform_0(%arg0: i32) -> (i32, i32) {
    %c0_i32 = arith.constant 0 : i32
    %c0_i32_0 = arith.constant 0 : i32
    return %arg0, %c0_i32 : i32, i32
  }
  func.func @transform_1(%arg0: i32) -> (i32, i32) {
    %c0_i32 = arith.constant 0 : i32
    %c0_i32_0 = arith.constant 0 : i32
    %c0_i32_1 = arith.constant 0 : i32
    return %c0_i32, %c0_i32_0 : i32, i32
  }
  func.func @transform_2(%arg0: i32) -> (i32, i32) {
    %c0_i32 = arith.constant 0 : i32
    %c0_i32_0 = arith.constant 0 : i32
    %c0_i32_1 = arith.constant 0 : i32
    return %c0_i32, %c0_i32_0 : i32, i32
  }
  func.func @transform_3(%arg0: i32) -> (i32, i32) {
    %c0_i32 = arith.constant 0 : i32
    %c0_i32_0 = arith.constant 0 : i32
    %c0_i32_1 = arith.constant 0 : i32
    return %c0_i32, %c0_i32_0 : i32, i32
  }
  func.func @transform_4(%arg0: i32) -> (i32, i32) {
    %c0_i32 = arith.constant 0 : i32
    %c0_i32_0 = arith.constant 0 : i32
    %c0_i32_1 = arith.constant 0 : i32
    return %c0_i32, %c0_i32_0 : i32, i32
  }
  func.func @transform_5(%arg0: i32) -> (i32, i32) {
    %c0_i32 = arith.constant 0 : i32
    %c0_i32_0 = arith.constant 0 : i32
    return %arg0, %c0_i32 : i32, i32
  }
}

module attributes {stable_mosaic.version = 11 : i64} {
  func.func @highway_kernel(%arg0: i32, %arg1: memref<8x128xf32, #tpu.memory_space<vmem>>, %arg2: memref<128x128xf32, #tpu.memory_space<vmem>>, %arg3: memref<1x128xf32, #tpu.memory_space<vmem>>, %arg4: memref<128x128xf32, #tpu.memory_space<vmem>>, %arg5: memref<1x128xf32, #tpu.memory_space<vmem>>, %arg6: memref<8x128xf32, #tpu.memory_space<vmem>>) attributes {dimension_semantics = [#tpu.dimension_semantics<parallel>], iteration_bounds = array<i64: 1>, scalar_prefetch = 0 : i64, scratch_operands = 0 : i64, tpu.core_type = #tpu.core_type<tc>, window_params = [{transform_indices = @transform_0, window_bounds = array<i64: 8, 128>}, {pipeline_mode = #tpu.pipeline_mode<synchronous>, transform_indices = @transform_1, window_bounds = array<i64: 128, 128>}, {pipeline_mode = #tpu.pipeline_mode<synchronous>, transform_indices = @transform_2, window_bounds = array<i64: 1, 128>}, {pipeline_mode = #tpu.pipeline_mode<synchronous>, transform_indices = @transform_3, window_bounds = array<i64: 128, 128>}, {pipeline_mode = #tpu.pipeline_mode<synchronous>, transform_indices = @transform_4, window_bounds = array<i64: 1, 128>}, {transform_indices = @transform_5, window_bounds = array<i64: 8, 128>}]} {
    %c0 = arith.constant 0 : index
    %c0_0 = arith.constant 0 : index
    %0 = vector.load %arg1[%c0, %c0_0] : memref<8x128xf32, #tpu.memory_space<vmem>>, vector<8x128xf32>
    %c0_1 = arith.constant 0 : index
    %c0_2 = arith.constant 0 : index
    %1 = vector.load %arg2[%c0_1, %c0_2] : memref<128x128xf32, #tpu.memory_space<vmem>>, vector<128x128xf32>
    %cst = arith.constant dense<0.000000e+00> : vector<8x128xf32>
    %2 = tpu.matmul %0, %1, %cst {dimension_numbers = #tpu.dot_dimension_numbers<[1], [0], [0], [1], [0, 0, 1, 1], [], []>} : vector<8x128xf32>, vector<128x128xf32>, vector<8x128xf32> -> vector<8x128xf32>
    %c0_3 = arith.constant 0 : index
    %c0_4 = arith.constant 0 : index
    %3 = vector.load %arg3[%c0_3, %c0_4] : memref<1x128xf32, #tpu.memory_space<vmem>>, vector<1x128xf32>
    %4 = vector.broadcast %3 : vector<1x128xf32> to vector<8x128xf32>
    %5 = arith.addf %2, %4 : vector<8x128xf32>
    %cst_5 = arith.constant 0.000000e+00 : f32
    %6 = vector.broadcast %cst_5 : f32 to vector<8x128xf32>
    %7 = arith.maximumf %5, %6 : vector<8x128xf32>
    %c0_6 = arith.constant 0 : index
    %c0_7 = arith.constant 0 : index
    %8 = vector.load %arg4[%c0_6, %c0_7] : memref<128x128xf32, #tpu.memory_space<vmem>>, vector<128x128xf32>
    %cst_8 = arith.constant dense<0.000000e+00> : vector<8x128xf32>
    %9 = tpu.matmul %0, %8, %cst_8 {dimension_numbers = #tpu.dot_dimension_numbers<[1], [0], [0], [1], [0, 0, 1, 1], [], []>} : vector<8x128xf32>, vector<128x128xf32>, vector<8x128xf32> -> vector<8x128xf32>
    %c0_9 = arith.constant 0 : index
    %c0_10 = arith.constant 0 : index
    %10 = vector.load %arg5[%c0_9, %c0_10] : memref<1x128xf32, #tpu.memory_space<vmem>>, vector<1x128xf32>
    %11 = vector.broadcast %10 : vector<1x128xf32> to vector<8x128xf32>
    %12 = arith.addf %9, %11 : vector<8x128xf32>
    %13 = arith.negf %12 : vector<8x128xf32>
    %14 = math.exp %13 : vector<8x128xf32>
    %cst_11 = arith.constant 1.000000e+00 : f32
    %15 = vector.broadcast %cst_11 : f32 to vector<8x128xf32>
    %16 = arith.addf %15, %14 : vector<8x128xf32>
    %17 = arith.divf %15, %16 : vector<8x128xf32>
    %18 = arith.subf %7, %0 : vector<8x128xf32>
    %19 = arith.mulf %17, %18 : vector<8x128xf32>
    %20 = arith.addf %0, %19 : vector<8x128xf32>
    %c0_12 = arith.constant 0 : index
    %c0_13 = arith.constant 0 : index
    %21 = vector.load %arg6[%c0_12, %c0_13] : memref<8x128xf32, #tpu.memory_space<vmem>>, vector<8x128xf32>
    tpu.vector_store %arg6[%c0_12, %c0_13], %20 {strides = array<i32>} : memref<8x128xf32, #tpu.memory_space<vmem>>, vector<8x128xf32>,
    return
  }
  func.func @transform_0(%arg0: i32) -> (i32, i32) {
    %c0_i32 = arith.constant 0 : i32
    %c0_i32_0 = arith.constant 0 : i32
    return %arg0, %c0_i32 : i32, i32
  }
  func.func @transform_1(%arg0: i32) -> (i32, i32) {
    %c0_i32 = arith.constant 0 : i32
    %c0_i32_0 = arith.constant 0 : i32
    %c0_i32_1 = arith.constant 0 : i32
    return %c0_i32, %c0_i32_0 : i32, i32
  }
  func.func @transform_2(%arg0: i32) -> (i32, i32) {
    %c0_i32 = arith.constant 0 : i32
    %c0_i32_0 = arith.constant 0 : i32
    %c0_i32_1 = arith.constant 0 : i32
    return %c0_i32, %c0_i32_0 : i32, i32
  }
  func.func @transform_3(%arg0: i32) -> (i32, i32) {
    %c0_i32 = arith.constant 0 : i32
    %c0_i32_0 = arith.constant 0 : i32
    %c0_i32_1 = arith.constant 0 : i32
    return %c0_i32, %c0_i32_0 : i32, i32
  }
  func.func @transform_4(%arg0: i32) -> (i32, i32) {
    %c0_i32 = arith.constant 0 : i32
    %c0_i32_0 = arith.constant 0 : i32
    %c0_i32_1 = arith.constant 0 : i32
    return %c0_i32, %c0_i32_0 : i32, i32
  }
  func.func @transform_5(%arg0: i32) -> (i32, i32) {
    %c0_i32 = arith.constant 0 : i32
    %c0_i32_0 = arith.constant 0 : i32
    return %arg0, %c0_i32 : i32, i32
  }
}

</mosaic_0001>

<bundles_post_ra>
// kernel: tpu_custom_call.1
= control target key start
LH: loop header
LB: loop body
LE: loop exit
PB: predicated region body
PF: predicated region fallthrough
CT: control target
= control target key end

     0   :  { %10 = vsyncpa [#allocation3], 0  ;;  %s569_s0 = inlined_call_operand.hbm [shape: f32[8,128], index: 0, kind: input, shape index: {}]   ;;  %s570_s1 = inlined_call_operand.hbm [shape: f32[128,128], index: 1, kind: input, shape index: {}]   ;;  %s571_s2 = inlined_call_operand.vmem [shape: f32[1,128], index: 2, kind: input, shape index: {}]   ;;  %s572_s3 = inlined_call_operand.hbm [shape: f32[128,128], index: 3, kind: input, shape index: {}]   ;;  %s573_s4 = inlined_call_operand.vmem [shape: f32[1,128], index: 4, kind: input, shape index: {}]   ;;  %s574_s5 = inlined_call_operand.hbm [shape: f32[8,128], index: 5, kind: output, shape index: {}]  }
   0x1   :  { %11 = vsyncpa [#allocation6], 0 }
   0x2   :  { %12 = vsyncpa [#allocation4], 0  ;;  %s479_s18 = smov [#allocation5]  }
   0x3   :  { %s28_s19 = sshll.u32 %s479_s18, 4  ;;  %s29_s19 = int_to_ptr.vmem [resolvable:$true] %s28_s19 }
   0x4   :  { %s401_s20 = scalar_lea.vmem %s29_s19, 2048  ;;  %p406_p1 = scmp.lt.s32.totalorder %s29_s19, %s29_s19 }
   0x5   :  { %p402_p0 = scmp.ne.s32.totalorder %s29_s19, %s401_s20  ;;  %p407_p2 = scmp.lt.s32.totalorder %s401_s20, %s401_s20 }
   0x7   :  { %p408_p3 = por %p407_p2, %p406_p1 }
   0x9   :  { %p409_p4 = pnand %p408_p3, %p402_p0 }
   0xb   :  { %412 = shalt.err (!%p409_p4)
}
   0xc   :  { %s480_s21 = smov 128   ;;  %s481_s22 = smov 8  }
   0xd   :  { %34 = dma.hbm_to_vmem [thread:$0]  %s570_s1, 2048, %s29_s19, [#allocation6], %s480_s21, %s480_s21, %s481_s22  }
   0xe   :  { %s482_s25 = smov [#allocation2]   ;;  %s483_s27 = smov [#allocation7]  }
   0xf   :  { %s19_s26 = sshll.u32 %s482_s25, 4  ;;  %s42_s28 = sshll.u32 %s483_s27, 4  ;;  %s20_s26 = int_to_ptr.vmem [resolvable:$true] %s19_s26  ;;  %s43_s28 = int_to_ptr.vmem [resolvable:$true] %s42_s28 }
  0x10   :  { %s421_s29 = scalar_lea.vmem %s20_s26, 128  ;;  %p426_p6 = scmp.lt.s32.totalorder %s20_s26, %s20_s26 }
  0x11   :  { %p422_p5 = scmp.ne.s32.totalorder %s20_s26, %s421_s29  ;;  %p427_p7 = scmp.lt.s32.totalorder %s421_s29, %s421_s29 }
  0x13   :  { %p428_p8 = por %p427_p7, %p426_p6 }
  0x15   :  { %p429_p9 = pnand %p428_p8, %p422_p5 }
  0x17   :  { %432 = shalt.err (!%p429_p9)
}
  0x18   :  { %22 = dma.hbm_to_vmem [thread:$0]  %s569_s0, 128, %s20_s26, [#allocation3]  }
  0x19   :  { %s441_s7 = scalar_lea.vmem %s43_s28, 2048  ;;  %p446_p11 = scmp.lt.s32.totalorder %s43_s28, %s43_s28 }
  0x1a   :  { %p442_p10 = scmp.ne.s32.totalorder %s43_s28, %s441_s7  ;;  %p447_p12 = scmp.lt.s32.totalorder %s441_s7, %s441_s7 }
  0x1c   :  { %p448_p13 = por %p447_p12, %p446_p11 }
  0x1e   :  { %p449_p0 = pnand %p448_p13, %p442_p10 }
  0x20   :  { %452 = shalt.err (!%p449_p0)
}
  0x21   :  { %48 = dma.hbm_to_vmem [thread:$0]  %s572_s3, 2048, %s43_s28, [#allocation6], %s480_s21, %s480_s21, %s481_s22  }
  0x22   :  { %473 = dma.done.wait [#allocation3], 128  }
  0x23   :  { %474 = vsyncadd [#allocation3], 4294967168 }
  0x24   :  { %475 = dma.done.wait [#allocation6], 4096  }
  0x25   :  { %476 = vsyncadd [#allocation6], 4294963200  ;;  %v484_v0 = vmov 0.0   ;;  %vm485_vm0 = vmmov 0   ;;  %v170_v1 = vld [vmem:[#allocation7 + $0x78] sm:$0xff]  ;;  %v169_v2 = vld [vmem:[#allocation7 + $0x70] sm:$0xff] }
  0x26   :  { %346 = vmatprep.subr.mxu1 %v484_v0  ;;  %311 = vmatprep.subr.mxu0 %v484_v0  ;;  %v168_v3 = vld [vmem:[#allocation7 + $0x68] sm:$0xff]  ;;  %v167_v4 = vld [vmem:[#allocation7 + $0x60] sm:$0xff]  ;;  %v76_v5 = vld [vmem:[#allocation5 + $0x78] sm:$0xff]  ;;  %s486_s11 = smov [#allocation8]  }
  0x27   :  { %378 = vmatprep.mubr.msk.f32.mxu1 %vm485_vm0, %v484_v0  ;;  %343 = vmatprep.mubr.msk.f32.mxu0 %vm485_vm0, %v484_v0  ;;  %v75_v6 = vld [vmem:[#allocation5 + $0x70] sm:$0xff]  ;;  %v166_v7 = vld [vmem:[#allocation7 + $0x58] sm:$0xff]  ;;  %v74_v8 = vld [vmem:[#allocation5 + $0x68] sm:$0xff] }
  0x28   :  { %347 = vmatpush3.msra.mxu1 %v170_v1  ;;  %312 = vmatpush3.msra.mxu0 %v76_v5  ;;  %v165_v9 = vld [vmem:[#allocation7 + $0x50] sm:$0xff]  ;;  %v73_v10 = vld [vmem:[#allocation5 + $0x60] sm:$0xff]  ;;  %v164_v11 = vld [vmem:[#allocation7 + $0x48] sm:$0xff] }
  0x29   :  { %348 = vmatprep.subr.mxu1 %v484_v0  ;;  %313 = vmatprep.subr.mxu0 %v484_v0  ;;  %v72_v12 = vld [vmem:[#allocation5 + $0x58] sm:$0xff]  ;;  %v163_v13 = vld [vmem:[#allocation7 + $0x40] sm:$0xff]  ;;  %v71_v14 = vld [vmem:[#allocation5 + $0x50] sm:$0xff] }
  0x2a   :  { %349 = vmatpush3.msra.mxu1 %v169_v2  ;;  %314 = vmatpush3.msra.mxu0 %v75_v6  ;;  %v162_v15 = vld [vmem:[#allocation7 + $0x38] sm:$0xff]  ;;  %v70_v16 = vld [vmem:[#allocation5 + $0x48] sm:$0xff]  ;;  %v161_v17 = vld [vmem:[#allocation7 + $0x30] sm:$0xff] }
  0x2b   :  { %350 = vmatprep.subr.mxu1 %v484_v0  ;;  %315 = vmatprep.subr.mxu0 %v484_v0  ;;  %v69_v18 = vld [vmem:[#allocation5 + $0x40] sm:$0xff]  ;;  %v160_v19 = vld [vmem:[#allocation7 + $0x28] sm:$0xff]  ;;  %v68_v20 = vld [vmem:[#allocation5 + $0x38] sm:$0xff] }
  0x2c   :  { %351 = vmatpush3.msra.mxu1 %v168_v3  ;;  %316 = vmatpush3.msra.mxu0 %v74_v8  ;;  %v159_v21 = vld [vmem:[#allocation7 + $0x20] sm:$0xff]  ;;  %v67_v22 = vld [vmem:[#allocation5 + $0x30] sm:$0xff]  ;;  %v158_v23 = vld [vmem:[#allocation7 + $0x18] sm:$0xff] }
  0x2d   :  { %352 = vmatprep.subr.mxu1 %v484_v0  ;;  %317 = vmatprep.subr.mxu0 %v484_v0  ;;  %v66_v24 = vld [vmem:[#allocation5 + $0x28] sm:$0xff]  ;;  %v157_v25 = vld [vmem:[#allocation7 + $0x10] sm:$0xff]  ;;  %v65_v26 = vld [vmem:[#allocation5 + $0x20] sm:$0xff] }
  0x2e   :  { %353 = vmatpush3.msra.mxu1 %v167_v4  ;;  %318 = vmatpush3.msra.mxu0 %v73_v10  ;;  %v156_v27 = vld [vmem:[#allocation7 + $0x8] sm:$0xff]  ;;  %v64_v28 = vld [vmem:[#allocation5 + $0x18] sm:$0xff]  ;;  %v155_v29 = vld [vmem:[#allocation7] sm:$0xff] }
  0x2f   :  { %354 = vmatprep.subr.mxu1 %v484_v0  ;;  %319 = vmatprep.subr.mxu0 %v484_v0  ;;  %v63_v30 = vld [vmem:[#allocation5 + $0x10] sm:$0xff]  ;;  %v60_v31 = vld [vmem:[#allocation2] sm:$0xff]  ;;  %v62_v32 = vld [vmem:[#allocation5 + $0x8] sm:$0xff] }
  0x30   :  { %355 = vmatpush3.msra.mxu1 %v166_v7  ;;  %320 = vmatpush3.msra.mxu0 %v72_v12  ;;  %v61_v33 = vld [vmem:[#allocation5] sm:$0xff]  ;;  %v275_v34 = vld [vmem:[%s573_s4] ss:$0 sm:$0xff]  ;;  %s264_s4 = sshll.u32 %s486_s11, 4  ;;  %s265_s4 = int_to_ptr.vmem [resolvable:$true] %s264_s4 }
  0x31   :  { %356 = vmatprep.subr.mxu1 %v484_v0  ;;  %321 = vmatprep.subr.mxu0 %v484_v0  ;;  %v274_v43 = vld [vmem:[%s571_s2] ss:$0 sm:$0xff]  ;;  %s453_s12 = scalar_lea.vmem %s265_s4, 128  ;;  %p458_p2 = scmp.lt.s32.totalorder %s265_s4, %s265_s4 }
  0x32   :  { %357 = vmatpush3.msra.mxu1 %v165_v9  ;;  %322 = vmatpush3.msra.mxu0 %v71_v14  ;;  %p454_p1 = scmp.ne.s32.totalorder %s265_s4, %s453_s12  ;;  %p459_p3 = scmp.lt.s32.totalorder %s453_s12, %s453_s12 }
  0x33   :  { %358 = vmatprep.subr.mxu1 %v484_v0  ;;  %323 = vmatprep.subr.mxu0 %v484_v0 }
  0x34   :  { %359 = vmatpush3.msra.mxu1 %v164_v11  ;;  %324 = vmatpush3.msra.mxu0 %v70_v16  ;;  %p460_p4 = por %p459_p3, %p458_p2 }
  0x35   :  { %360 = vmatprep.subr.mxu1 %v484_v0  ;;  %325 = vmatprep.subr.mxu0 %v484_v0 }
  0x36   :  { %361 = vmatpush3.msra.mxu1 %v163_v13  ;;  %326 = vmatpush3.msra.mxu0 %v69_v18  ;;  %p461_p5 = pnand %p460_p4, %p454_p1 }
  0x37   :  { %362 = vmatprep.subr.mxu1 %v484_v0  ;;  %327 = vmatprep.subr.mxu0 %v484_v0 }
  0x38   :  { %363 = vmatpush3.msra.mxu1 %v162_v15  ;;  %328 = vmatpush3.msra.mxu0 %v68_v20 }
  0x39   :  { %364 = vmatprep.subr.mxu1 %v484_v0  ;;  %329 = vmatprep.subr.mxu0 %v484_v0 }
  0x3a   :  { %365 = vmatpush3.msra.mxu1 %v161_v17  ;;  %330 = vmatpush3.msra.mxu0 %v67_v22 }
  0x3b   :  { %366 = vmatprep.subr.mxu1 %v484_v0  ;;  %331 = vmatprep.subr.mxu0 %v484_v0 }
  0x3c   :  { %367 = vmatpush3.msra.mxu1 %v160_v19  ;;  %332 = vmatpush3.msra.mxu0 %v66_v24 }
  0x3d   :  { %368 = vmatprep.subr.mxu1 %v484_v0  ;;  %333 = vmatprep.subr.mxu0 %v484_v0 }
  0x3e   :  { %369 = vmatpush3.msra.mxu1 %v159_v21  ;;  %334 = vmatpush3.msra.mxu0 %v65_v26 }
  0x3f   :  { %370 = vmatprep.subr.mxu1 %v484_v0  ;;  %335 = vmatprep.subr.mxu0 %v484_v0 }
  0x40   :  { %371 = vmatpush3.msra.mxu1 %v158_v23  ;;  %336 = vmatpush3.msra.mxu0 %v64_v28 }
  0x41   :  { %372 = vmatprep.subr.mxu1 %v484_v0  ;;  %337 = vmatprep.subr.mxu0 %v484_v0 }
  0x42   :  { %373 = vmatpush3.msra.mxu1 %v157_v25  ;;  %338 = vmatpush3.msra.mxu0 %v63_v30 }
  0x43   :  { %374 = vmatprep.subr.mxu1 %v484_v0  ;;  %339 = vmatprep.subr.mxu0 %v484_v0 }
  0x44   :  { %375 = vmatpush3.msra.mxu1 %v156_v27  ;;  %340 = vmatpush3.msra.mxu0 %v62_v32 }
  0x45   :  { %376 = vmatprep.subr.mxu1 %v484_v0  ;;  %341 = vmatprep.subr.mxu0 %v484_v0 }
  0x46   :  { %377 = vmatpush3.msra.mxu1 %v155_v29  ;;  %342 = vmatpush3.msra.mxu0 %v61_v33 }
  0x47   :  { %379 = vmatmul.mubr.f32.vlgmr.msra.gmra.mxu1 %v60_v31  ;;  %344 = vmatmul.mubr.f32.vlgmr.msra.gmra.mxu0 %v60_v31 }
 0x107   :  { %v244_v35 = vpop.f32.mrf.mxu1  ;;  %v150_v39 = vpop.f32.mrf.mxu0 }
 0x108   :  { %v245_v36 = vadd.f32 %v275_v34, %v244_v35  ;;  %v151_v44 = vadd.f32 %v274_v43, %v150_v39 }
 0x109   :  { %v380_v37 = vpop.f32.mrf.mxu1  ;;  %v345_v40 = vpop.f32.mrf.mxu0 }
 0x10a   :  { %v276_v38 = vmul.f32 -1.442695, %v245_v36  ;;  %v154_v45 = vmax.f32 %v151_v44, 0.0 }
 0x10c   :  { %389 = vpow2.f32 %v276_v38  ;;  %v254_v46 = vsub.f32 %v154_v45, %v60_v31 }
 0x119   :  { %v390_v41 = vpop.eup %389 }
 0x11a   :  { %v251_v42 = vadd.f32 1.0, %v390_v41 }
 0x11c   :  { %391 = vrcp.f32 %v251_v42 }
 0x129   :  { %v392_v47 = vpop.eup %391 }
 0x12a   :  { %v255_v48 = vmul.f32 %v392_v47, %v254_v46 }
 0x12c   :  { %v256_v49 = vadd.f32 %v255_v48, %v60_v31 }
 0x12e   :  { %257 = vst [vmem:[#allocation8] sm:$0xff] %v256_v49 }
 0x12f   :  { %464 = shalt.err (!%p461_p5)
}
 0x130   :  { %267 = dma.vmem_to_hbm [thread:$0]  %s265_s4, 128, %s574_s5, [#allocation4]  }
 0x131   :  { %477 = dma.done.wait [#allocation4], 128  }
 0x132   :  { %478 = vsyncadd [#allocation4], 4294967168 }
 0x133   :  { %271 = vsyncpa [#allocation3], 1 }
 0x134   :  { %272 = vsyncpa [#allocation6], 1 }
 0x135   :  { %273 = vsyncpa [#allocation4], 1 }

// kernel: tpu_custom_call.1
= control target key start
LH: loop header
LB: loop body
LE: loop exit
PB: predicated region body
PF: predicated region fallthrough
CT: control target
= control target key end

     0   :  { %10 = vsyncpa [#allocation3], 0  ;;  %s569_s0 = inlined_call_operand.hbm [shape: f32[8,128], index: 0, kind: input, shape index: {}]   ;;  %s570_s1 = inlined_call_operand.hbm [shape: f32[128,128], index: 1, kind: input, shape index: {}]   ;;  %s571_s2 = inlined_call_operand.vmem [shape: f32[1,128], index: 2, kind: input, shape index: {}]   ;;  %s572_s3 = inlined_call_operand.hbm [shape: f32[128,128], index: 3, kind: input, shape index: {}]   ;;  %s573_s4 = inlined_call_operand.vmem [shape: f32[1,128], index: 4, kind: input, shape index: {}]   ;;  %s574_s5 = inlined_call_operand.hbm [shape: f32[8,128], index: 5, kind: output, shape index: {}]  }
   0x1   :  { %11 = vsyncpa [#allocation6], 0 }
   0x2   :  { %12 = vsyncpa [#allocation4], 0  ;;  %s479_s18 = smov [#allocation5]  }
   0x3   :  { %s28_s19 = sshll.u32 %s479_s18, 4  ;;  %s29_s19 = int_to_ptr.vmem [resolvable:$true] %s28_s19 }
   0x4   :  { %s401_s20 = scalar_lea.vmem %s29_s19, 2048  ;;  %p406_p1 = scmp.lt.s32.totalorder %s29_s19, %s29_s19 }
   0x5   :  { %p402_p0 = scmp.ne.s32.totalorder %s29_s19, %s401_s20  ;;  %p407_p2 = scmp.lt.s32.totalorder %s401_s20, %s401_s20 }
   0x7   :  { %p408_p3 = por %p407_p2, %p406_p1 }
   0x9   :  { %p409_p4 = pnand %p408_p3, %p402_p0 }
   0xb   :  { %412 = shalt.err (!%p409_p4)
}
   0xc   :  { %s480_s21 = smov 128   ;;  %s481_s22 = smov 8  }
   0xd   :  { %34 = dma.hbm_to_vmem [thread:$0]  %s570_s1, 2048, %s29_s19, [#allocation6], %s480_s21, %s480_s21, %s481_s22  }
   0xe   :  { %s482_s25 = smov [#allocation2]   ;;  %s483_s27 = smov [#allocation7]  }
   0xf   :  { %s19_s26 = sshll.u32 %s482_s25, 4  ;;  %s42_s28 = sshll.u32 %s483_s27, 4  ;;  %s20_s26 = int_to_ptr.vmem [resolvable:$true] %s19_s26  ;;  %s43_s28 = int_to_ptr.vmem [resolvable:$true] %s42_s28 }
  0x10   :  { %s421_s29 = scalar_lea.vmem %s20_s26, 128  ;;  %p426_p6 = scmp.lt.s32.totalorder %s20_s26, %s20_s26 }
  0x11   :  { %p422_p5 = scmp.ne.s32.totalorder %s20_s26, %s421_s29  ;;  %p427_p7 = scmp.lt.s32.totalorder %s421_s29, %s421_s29 }
  0x13   :  { %p428_p8 = por %p427_p7, %p426_p6 }
  0x15   :  { %p429_p9 = pnand %p428_p8, %p422_p5 }
  0x17   :  { %432 = shalt.err (!%p429_p9)
}
  0x18   :  { %22 = dma.hbm_to_vmem [thread:$0]  %s569_s0, 128, %s20_s26, [#allocation3]  }
  0x19   :  { %s441_s7 = scalar_lea.vmem %s43_s28, 2048  ;;  %p446_p11 = scmp.lt.s32.totalorder %s43_s28, %s43_s28 }
  0x1a   :  { %p442_p10 = scmp.ne.s32.totalorder %s43_s28, %s441_s7  ;;  %p447_p12 = scmp.lt.s32.totalorder %s441_s7, %s441_s7 }
  0x1c   :  { %p448_p13 = por %p447_p12, %p446_p11 }
  0x1e   :  { %p449_p0 = pnand %p448_p13, %p442_p10 }
  0x20   :  { %452 = shalt.err (!%p449_p0)
}
  0x21   :  { %48 = dma.hbm_to_vmem [thread:$0]  %s572_s3, 2048, %s43_s28, [#allocation6], %s480_s21, %s480_s21, %s481_s22  }
  0x22   :  { %473 = dma.done.wait [#allocation3], 128  }
  0x23   :  { %474 = vsyncadd [#allocation3], 4294967168 }
  0x24   :  { %475 = dma.done.wait [#allocation6], 4096  }
  0x25   :  { %476 = vsyncadd [#allocation6], 4294963200  ;;  %v484_v0 = vmov 0.0   ;;  %vm485_vm0 = vmmov 0   ;;  %v170_v1 = vld [vmem:[#allocation7 + $0x78] sm:$0xff]  ;;  %v169_v2 = vld [vmem:[#allocation7 + $0x70] sm:$0xff] }
  0x26   :  { %346 = vmatprep.subr.mxu1 %v484_v0  ;;  %311 = vmatprep.subr.mxu0 %v484_v0  ;;  %v168_v3 = vld [vmem:[#allocation7 + $0x68] sm:$0xff]  ;;  %v167_v4 = vld [vmem:[#allocation7 + $0x60] sm:$0xff]  ;;  %v76_v5 = vld [vmem:[#allocation5 + $0x78] sm:$0xff]  ;;  %s486_s11 = smov [#allocation8]  }
  0x27   :  { %378 = vmatprep.mubr.msk.f32.mxu1 %vm485_vm0, %v484_v0  ;;  %343 = vmatprep.mubr.msk.f32.mxu0 %vm485_vm0, %v484_v0  ;;  %v75_v6 = vld [vmem:[#allocation5 + $0x70] sm:$0xff]  ;;  %v166_v7 = vld [vmem:[#allocation7 + $0x58] sm:$0xff]  ;;  %v74_v8 = vld [vmem:[#allocation5 + $0x68] sm:$0xff] }
  0x28   :  { %347 = vmatpush3.msra.mxu1 %v170_v1  ;;  %312 = vmatpush3.msra.mxu0 %v76_v5  ;;  %v165_v9 = vld [vmem:[#allocation7 + $0x50] sm:$0xff]  ;;  %v73_v10 = vld [vmem:[#allocation5 + $0x60] sm:$0xff]  ;;  %v164_v11 = vld [vmem:[#allocation7 + $0x48] sm:$0xff] }
  0x29   :  { %348 = vmatprep.subr.mxu1 %v484_v0  ;;  %313 = vmatprep.subr.mxu0 %v484_v0  ;;  %v72_v12 = vld [vmem:[#allocation5 + $0x58] sm:$0xff]  ;;  %v163_v13 = vld [vmem:[#allocation7 + $0x40] sm:$0xff]  ;;  %v71_v14 = vld [vmem:[#allocation5 + $0x50] sm:$0xff] }
  0x2a   :  { %349 = vmatpush3.msra.mxu1 %v169_v2  ;;  %314 = vmatpush3.msra.mxu0 %v75_v6  ;;  %v162_v15 = vld [vmem:[#allocation7 + $0x38] sm:$0xff]  ;;  %v70_v16 = vld [vmem:[#allocation5 + $0x48] sm:$0xff]  ;;  %v161_v17 = vld [vmem:[#allocation7 + $0x30] sm:$0xff] }
  0x2b   :  { %350 = vmatprep.subr.mxu1 %v484_v0  ;;  %315 = vmatprep.subr.mxu0 %v484_v0  ;;  %v69_v18 = vld [vmem:[#allocation5 + $0x40] sm:$0xff]  ;;  %v160_v19 = vld [vmem:[#allocation7 + $0x28] sm:$0xff]  ;;  %v68_v20 = vld [vmem:[#allocation5 + $0x38] sm:$0xff] }
  0x2c   :  { %351 = vmatpush3.msra.mxu1 %v168_v3  ;;  %316 = vmatpush3.msra.mxu0 %v74_v8  ;;  %v159_v21 = vld [vmem:[#allocation7 + $0x20] sm:$0xff]  ;;  %v67_v22 = vld [vmem:[#allocation5 + $0x30] sm:$0xff]  ;;  %v158_v23 = vld [vmem:[#allocation7 + $0x18] sm:$0xff] }
  0x2d   :  { %352 = vmatprep.subr.mxu1 %v484_v0  ;;  %317 = vmatprep.subr.mxu0 %v484_v0  ;;  %v66_v24 = vld [vmem:[#allocation5 + $0x28] sm:$0xff]  ;;  %v157_v25 = vld [vmem:[#allocation7 + $0x10] sm:$0xff]  ;;  %v65_v26 = vld [vmem:[#allocation5 + $0x20] sm:$0xff] }
  0x2e   :  { %353 = vmatpush3.msra.mxu1 %v167_v4  ;;  %318 = vmatpush3.msra.mxu0 %v73_v10  ;;  %v156_v27 = vld [vmem:[#allocation7 + $0x8] sm:$0xff]  ;;  %v64_v28 = vld [vmem:[#allocation5 + $0x18] sm:$0xff]  ;;  %v155_v29 = vld [vmem:[#allocation7] sm:$0xff] }
  0x2f   :  { %354 = vmatprep.subr.mxu1 %v484_v0  ;;  %319 = vmatprep.subr.mxu0 %v484_v0  ;;  %v63_v30 = vld [vmem:[#allocation5 + $0x10] sm:$0xff]  ;;  %v60_v31 = vld [vmem:[#allocation2] sm:$0xff]  ;;  %v62_v32 = vld [vmem:[#allocation5 + $0x8] sm:$0xff] }
  0x30   :  { %355 = vmatpush3.msra.mxu1 %v166_v7  ;;  %320 = vmatpush3.msra.mxu0 %v72_v12  ;;  %v61_v33 = vld [vmem:[#allocation5] sm:$0xff]  ;;  %v275_v34 = vld [vmem:[%s573_s4] ss:$0 sm:$0xff]  ;;  %s264_s4 = sshll.u32 %s486_s11, 4  ;;  %s265_s4 = int_to_ptr.vmem [resolvable:$true] %s264_s4 }
  0x31   :  { %356 = vmatprep.subr.mxu1 %v484_v0  ;;  %321 = vmatprep.subr.mxu0 %v484_v0  ;;  %v274_v43 = vld [vmem:[%s571_s2] ss:$0 sm:$0xff]  ;;  %s453_s12 = scalar_lea.vmem %s265_s4, 128  ;;  %p458_p2 = scmp.lt.s32.totalorder %s265_s4, %s265_s4 }
  0x32   :  { %357 = vmatpush3.msra.mxu1 %v165_v9  ;;  %322 = vmatpush3.msra.mxu0 %v71_v14  ;;  %p454_p1 = scmp.ne.s32.totalorder %s265_s4, %s453_s12  ;;  %p459_p3 = scmp.lt.s32.totalorder %s453_s12, %s453_s12 }
  0x33   :  { %358 = vmatprep.subr.mxu1 %v484_v0  ;;  %323 = vmatprep.subr.mxu0 %v484_v0 }
  0x34   :  { %359 = vmatpush3.msra.mxu1 %v164_v11  ;;  %324 = vmatpush3.msra.mxu0 %v70_v16  ;;  %p460_p4 = por %p459_p3, %p458_p2 }
  0x35   :  { %360 = vmatprep.subr.mxu1 %v484_v0  ;;  %325 = vmatprep.subr.mxu0 %v484_v0 }
  0x36   :  { %361 = vmatpush3.msra.mxu1 %v163_v13  ;;  %326 = vmatpush3.msra.mxu0 %v69_v18  ;;  %p461_p5 = pnand %p460_p4, %p454_p1 }
  0x37   :  { %362 = vmatprep.subr.mxu1 %v484_v0  ;;  %327 = vmatprep.subr.mxu0 %v484_v0 }
  0x38   :  { %363 = vmatpush3.msra.mxu1 %v162_v15  ;;  %328 = vmatpush3.msra.mxu0 %v68_v20 }
  0x39   :  { %364 = vmatprep.subr.mxu1 %v484_v0  ;;  %329 = vmatprep.subr.mxu0 %v484_v0 }
  0x3a   :  { %365 = vmatpush3.msra.mxu1 %v161_v17  ;;  %330 = vmatpush3.msra.mxu0 %v67_v22 }
  0x3b   :  { %366 = vmatprep.subr.mxu1 %v484_v0  ;;  %331 = vmatprep.subr.mxu0 %v484_v0 }
  0x3c   :  { %367 = vmatpush3.msra.mxu1 %v160_v19  ;;  %332 = vmatpush3.msra.mxu0 %v66_v24 }
  0x3d   :  { %368 = vmatprep.subr.mxu1 %v484_v0  ;;  %333 = vmatprep.subr.mxu0 %v484_v0 }
  0x3e   :  { %369 = vmatpush3.msra.mxu1 %v159_v21  ;;  %334 = vmatpush3.msra.mxu0 %v65_v26 }
  0x3f   :  { %370 = vmatprep.subr.mxu1 %v484_v0  ;;  %335 = vmatprep.subr.mxu0 %v484_v0 }
  0x40   :  { %371 = vmatpush3.msra.mxu1 %v158_v23  ;;  %336 = vmatpush3.msra.mxu0 %v64_v28 }
  0x41   :  { %372 = vmatprep.subr.mxu1 %v484_v0  ;;  %337 = vmatprep.subr.mxu0 %v484_v0 }
  0x42   :  { %373 = vmatpush3.msra.mxu1 %v157_v25  ;;  %338 = vmatpush3.msra.mxu0 %v63_v30 }
  0x43   :  { %374 = vmatprep.subr.mxu1 %v484_v0  ;;  %339 = vmatprep.subr.mxu0 %v484_v0 }
  0x44   :  { %375 = vmatpush3.msra.mxu1 %v156_v27  ;;  %340 = vmatpush3.msra.mxu0 %v62_v32 }
  0x45   :  { %376 = vmatprep.subr.mxu1 %v484_v0  ;;  %341 = vmatprep.subr.mxu0 %v484_v0 }
  0x46   :  { %377 = vmatpush3.msra.mxu1 %v155_v29  ;;  %342 = vmatpush3.msra.mxu0 %v61_v33 }
  0x47   :  { %379 = vmatmul.mubr.f32.vlgmr.msra.gmra.mxu1 %v60_v31  ;;  %344 = vmatmul.mubr.f32.vlgmr.msra.gmra.mxu0 %v60_v31 }
 0x107   :  { %v244_v35 = vpop.f32.mrf.mxu1  ;;  %v150_v39 = vpop.f32.mrf.mxu0 }
 0x108   :  { %v245_v36 = vadd.f32 %v275_v34, %v244_v35  ;;  %v151_v44 = vadd.f32 %v274_v43, %v150_v39 }
 0x109   :  { %v380_v37 = vpop.f32.mrf.mxu1  ;;  %v345_v40 = vpop.f32.mrf.mxu0 }
 0x10a   :  { %v276_v38 = vmul.f32 -1.442695, %v245_v36  ;;  %v154_v45 = vmax.f32 %v151_v44, 0.0 }
 0x10c   :  { %389 = vpow2.f32 %v276_v38  ;;  %v254_v46 = vsub.f32 %v154_v45, %v60_v31 }
 0x119   :  { %v390_v41 = vpop.eup %389 }
 0x11a   :  { %v251_v42 = vadd.f32 1.0, %v390_v41 }
 0x11c   :  { %391 = vrcp.f32 %v251_v42 }
 0x129   :  { %v392_v47 = vpop.eup %391 }
 0x12a   :  { %v255_v48 = vmul.f32 %v392_v47, %v254_v46 }
 0x12c   :  { %v256_v49 = vadd.f32 %v255_v48, %v60_v31 }
 0x12e   :  { %257 = vst [vmem:[#allocation8] sm:$0xff] %v256_v49 }
 0x12f   :  { %464 = shalt.err (!%p461_p5)
}
 0x130   :  { %267 = dma.vmem_to_hbm [thread:$0]  %s265_s4, 128, %s574_s5, [#allocation4]  }
 0x131   :  { %477 = dma.done.wait [#allocation4], 128  }
 0x132   :  { %478 = vsyncadd [#allocation4], 4294967168 }
 0x133   :  { %271 = vsyncpa [#allocation3], 1 }
 0x134   :  { %272 = vsyncpa [#allocation6], 1 }
 0x135   :  { %273 = vsyncpa [#allocation4], 1 }

</bundles_post_ra>
